<compile_context>
chip_gen: v7x
topology: tpu7x:2x2x1
jax: 0.10.0
libtpu: 0.0.40
codegen_flags: <defaults>
</compile_context>

<pallas_src>
import jax
import jax.numpy as jnp
from jax.experimental import pallas as pl
from jax.experimental.pallas import tpu as pltpu


def mlp_kernel(x_ref, w0_ref, w1_ref, w2_ref, wo_ref, bh_ref, bo_ref, o_ref):
    # Weights arrive pre-cast to bf16 and stay VMEM-resident; only the activation
    # tiles are cast per step.  f32 accumulation via preferred_element_type.
    h = jnp.dot(x_ref[...].astype(jnp.bfloat16), w0_ref[...],
                preferred_element_type=jnp.float32)
    h = jnp.maximum(h + bh_ref[0:1, :], 0.0)

    h = jnp.dot(h.astype(jnp.bfloat16), w1_ref[...],
                preferred_element_type=jnp.float32)
    h = jnp.maximum(h + bh_ref[1:2, :], 0.0)

    h = jnp.dot(h.astype(jnp.bfloat16), w2_ref[...],
                preferred_element_type=jnp.float32)
    h = jnp.maximum(h + bh_ref[2:3, :], 0.0)

    # Width-1 head in f32: VPU multiply + XLU lane reduction, emitted lane-dense as a
    # (1, tile_b) row so the writeback is an unmasked, full-width store.
    s = jnp.sum(h * wo_ref[...], axis=-1) + bo_ref[0, 0]      # (tile_b,)
    o_ref[...] = s[None, :].astype(o_ref.dtype)               # (1, tile_b)


def mlp_forward(x, params, *, tile_b=1024):
    """x: (B, input_dim) f32.
    params = (w0, w1, w2, wo_row, b_hidden, bo):
      w0 (input_dim, N) bf16, w1/w2 (N, N) bf16, wo_row (1, N) f32,
      b_hidden (3, N) f32, bo (1, 1) f32."""
    w0, w1, w2, wo_row, b_hidden, bo = params
    B, input_dim = x.shape
    num_neurons = w0.shape[1]

    # Largest sane tile, but keep >=2 grid steps whenever the batch allows so
    # dimension_semantics=("parallel",) can use both TensorCores on v7x.
    half = -(-B // 2)                       # ceil(B / 2)
    half_rounded = -(-half // 128) * 128    # round up to a multiple of 128
    tile_b = max(128, min(tile_b, half_rounded))

    num_tiles = pl.cdiv(B, tile_b)
    b_pad = num_tiles * tile_b
    if b_pad != B:
        x = jnp.pad(x, ((0, b_pad - B), (0, 0)))

    const = lambda i: (0, 0)  # weights/biases: same block every step -> VMEM resident

    flops = 2 * b_pad * (input_dim * num_neurons
                         + 2 * num_neurons * num_neurons + num_neurons)
    bytes_accessed = (b_pad * input_dim * 4 + b_pad * 4                       # x in, y out
                      + (input_dim * num_neurons + 2 * num_neurons * num_neurons) * 2
                      + (4 * num_neurons + 1) * 4)                            # wo + biases

    out = pl.pallas_call(
        mlp_kernel,
        out_shape=jax.ShapeDtypeStruct((1, b_pad), jnp.float32),
        grid=(num_tiles,),
        in_specs=[
            pl.BlockSpec((tile_b, input_dim), lambda i: (i, 0)),       # x: batch-tiled
            pl.BlockSpec((input_dim, num_neurons), const),             # w0 (bf16, resident)
            pl.BlockSpec((num_neurons, num_neurons), const),           # w1 (bf16, resident)
            pl.BlockSpec((num_neurons, num_neurons), const),           # w2 (bf16, resident)
            pl.BlockSpec((1, num_neurons), const),                     # wo_row (f32, resident)
            pl.BlockSpec((3, num_neurons), const),                     # packed hidden biases
            pl.BlockSpec(memory_space=pltpu.MemorySpace.SMEM),         # scalar output bias
        ],
        out_specs=pl.BlockSpec((1, tile_b), lambda i: (0, i)),         # lane-dense output row
        compiler_params=pltpu.CompilerParams(
            dimension_semantics=("parallel",),   # shard batch tiles across TCs (v7x)
        ),
        cost_estimate=pl.CostEstimate(flops=flops, transcendentals=0,
                                      bytes_accessed=bytes_accessed),
    )(x, w0, w1, w2, wo_row, b_hidden, bo)
    return out[0, :B].reshape(B, 1)


def init_linear(key, fan_in, fan_out):
    """Mimics nn.Linear's uniform(-1/sqrt(fan_in), 1/sqrt(fan_in)) init; W stored (in, out)."""
    kw, kb = jax.random.split(key)
    bound = 1.0 / jnp.sqrt(jnp.float32(fan_in))
    w = jax.random.uniform(kw, (fan_in, fan_out), jnp.float32, -bound, bound)
    b = jax.random.uniform(kb, (1, fan_out), jnp.float32, -bound, bound)
    return w, b


def make_params(key, input_dim, num_neurons):
    """Returns (kernel_params with bf16 pre-cast weights, f32 params for reference)."""
    k0, k1, k2, ko = jax.random.split(key, 4)
    w0, b0 = init_linear(k0, input_dim, num_neurons)
    w1, b1 = init_linear(k1, num_neurons, num_neurons)
    w2, b2 = init_linear(k2, num_neurons, num_neurons)
    wo, bo = init_linear(ko, num_neurons, 1)                # wo: (N, 1)
    wo_row = wo.T                                           # head weight as (1, N) f32
    b_hidden = jnp.concatenate([b0, b1, b2], axis=0)        # (3, N) f32
    bo = bo.reshape(1, 1)

    kernel_params = (w0.astype(jnp.bfloat16), w1.astype(jnp.bfloat16),
                     w2.astype(jnp.bfloat16), wo_row, b_hidden, bo)
    f32_params = (w0, w1, w2, wo_row, b_hidden, bo)
    return kernel_params, f32_params


def reference_forward_bf16(x, params):
    """Reference with the exact same math as the kernel (bf16 matmul inputs, f32 acc)."""
    w0, w1, w2, wo_row, b_hidden, bo = params

    def bdot(a, w):
        return jnp.dot(a.astype(jnp.bfloat16), w.astype(jnp.bfloat16),
                       preferred_element_type=jnp.float32)

    h = jnp.maximum(bdot(x, w0) + b_hidden[0:1], 0.0)
    h = jnp.maximum(bdot(h, w1) + b_hidden[1:2], 0.0)
    h = jnp.maximum(bdot(h, w2) + b_hidden[2:3], 0.0)
    return jnp.sum(h * wo_row.astype(jnp.float32), axis=-1, keepdims=True) + bo[0, 0]


def reference_forward_f32(x, params):
    """Pure f32 reference matching the original PyTorch MLP semantics."""
    w0, w1, w2, wo_row, b_hidden, bo = params
    h = jnp.maximum(x @ w0 + b_hidden[0:1], 0.0)
    h = jnp.maximum(h @ w1 + b_hidden[1:2], 0.0)
    h = jnp.maximum(h @ w2 + b_hidden[2:3], 0.0)
    return h @ wo_row.T + bo


if __name__ == "__main__":
    # Shapes consistent with MLP(input_dim=32, num_neurons=128, num_layers=3).
    # batch=200 pads to 256 and exercises 2 batch tiles (both TCs on v7x).
    batch = 200
    input_dim = 32
    num_neurons = 128

    key = jax.random.PRNGKey(0)
    kx, kp = jax.random.split(key)

    x = jax.random.normal(kx, (batch, input_dim), jnp.float32)
    kernel_params, f32_params = make_params(kp, input_dim, num_neurons)

    out = jax.block_until_ready(mlp_forward(x, kernel_params))
    assert out.shape == (batch, 1), out.shape

    # Exact-math check (kernel vs identically-quantized reference).
    ref_bf16 = reference_forward_bf16(x, kernel_params)
    assert jnp.allclose(out, ref_bf16, atol=1e-3, rtol=1e-3), "mismatch vs bf16-math reference"

    # Semantics check vs full-f32 PyTorch-equivalent forward (loose tol for bf16 MXU inputs).
    ref_f32 = reference_forward_f32(x, f32_params)
    assert jnp.allclose(out, ref_f32, atol=1e-1, rtol=1e-1), "mismatch vs f32 reference"

    print("KERNEL_OK")
</pallas_src>

<mosaic_0001>
module attributes {stable_mosaic.version = 11 : i64} {
  func.func @mlp_kernel(%arg0: i32, %arg1: memref<128x32xf32, #tpu.memory_space<vmem>>, %arg2: memref<32x128xbf16, #tpu.memory_space<vmem>>, %arg3: memref<128x128xbf16, #tpu.memory_space<vmem>>, %arg4: memref<128x128xbf16, #tpu.memory_space<vmem>>, %arg5: memref<1x128xf32, #tpu.memory_space<vmem>>, %arg6: memref<3x128xf32, #tpu.memory_space<vmem>>, %arg7: memref<1x1xf32, #tpu.memory_space<smem>>, %arg8: memref<1x128xf32, #tpu.memory_space<vmem>>) attributes {dimension_semantics = [#tpu.dimension_semantics<parallel>], iteration_bounds = array<i64: 2>, scalar_prefetch = 0 : i64, scratch_operands = 0 : i64, tpu.core_type = #tpu.core_type<tc>, window_params = [{transform_indices = @transform_0, window_bounds = array<i64: 128, 32>}, {pipeline_mode = #tpu.pipeline_mode<synchronous>, transform_indices = @transform_1, window_bounds = array<i64: 32, 128>}, {pipeline_mode = #tpu.pipeline_mode<synchronous>, transform_indices = @transform_2, window_bounds = array<i64: 128, 128>}, {pipeline_mode = #tpu.pipeline_mode<synchronous>, transform_indices = @transform_3, window_bounds = array<i64: 128, 128>}, {pipeline_mode = #tpu.pipeline_mode<synchronous>, transform_indices = @transform_4, window_bounds = array<i64: 1, 128>}, {pipeline_mode = #tpu.pipeline_mode<synchronous>, transform_indices = @transform_5, window_bounds = array<i64: 3, 128>}, {transform_indices = @transform_6, window_bounds = array<i64: 1, 1>}, {transform_indices = @transform_7, window_bounds = array<i64: 1, 128>}]} {
    %c0 = arith.constant 0 : index
    %c0_0 = arith.constant 0 : index
    %0 = vector.load %arg1[%c0, %c0_0] : memref<128x32xf32, #tpu.memory_space<vmem>>, vector<128x32xf32>
    %1 = arith.truncf %0 : vector<128x32xf32> to vector<128x32xbf16>
    %c0_1 = arith.constant 0 : index
    %c0_2 = arith.constant 0 : index
    %2 = vector.load %arg2[%c0_1, %c0_2] : memref<32x128xbf16, #tpu.memory_space<vmem>>, vector<32x128xbf16>
    %cst = arith.constant dense<0.000000e+00> : vector<128x128xf32>
    %3 = tpu.matmul %1, %2, %cst {dimension_numbers = #tpu.dot_dimension_numbers<[1], [0], [0], [1], [0, 0, 1, 1], [], []>} : vector<128x32xbf16>, vector<32x128xbf16>, vector<128x128xf32> -> vector<128x128xf32>
    %c0_3 = arith.constant 0 : index
    %c0_4 = arith.constant 0 : index
    %4 = vector.load %arg6[%c0_3, %c0_4] : memref<3x128xf32, #tpu.memory_space<vmem>>, vector<1x128xf32>
    %5 = vector.broadcast %4 : vector<1x128xf32> to vector<128x128xf32>
    %6 = arith.addf %3, %5 : vector<128x128xf32>
    %cst_5 = arith.constant 0.000000e+00 : f32
    %7 = vector.broadcast %cst_5 : f32 to vector<128x128xf32>
    %8 = arith.maximumf %6, %7 : vector<128x128xf32>
    %9 = arith.truncf %8 : vector<128x128xf32> to vector<128x128xbf16>
    %c0_6 = arith.constant 0 : index
    %c0_7 = arith.constant 0 : index
    %10 = vector.load %arg3[%c0_6, %c0_7] : memref<128x128xbf16, #tpu.memory_space<vmem>>, vector<128x128xbf16>
    %cst_8 = arith.constant dense<0.000000e+00> : vector<128x128xf32>
    %11 = tpu.matmul %9, %10, %cst_8 {dimension_numbers = #tpu.dot_dimension_numbers<[1], [0], [0], [1], [0, 0, 1, 1], [], []>} : vector<128x128xbf16>, vector<128x128xbf16>, vector<128x128xf32> -> vector<128x128xf32>
    %c1 = arith.constant 1 : index
    %c0_9 = arith.constant 0 : index
    %12 = vector.load %arg6[%c1, %c0_9] : memref<3x128xf32, #tpu.memory_space<vmem>>, vector<1x128xf32>
    %13 = vector.broadcast %12 : vector<1x128xf32> to vector<128x128xf32>
    %14 = arith.addf %11, %13 : vector<128x128xf32>
    %cst_10 = arith.constant 0.000000e+00 : f32
    %15 = vector.broadcast %cst_10 : f32 to vector<128x128xf32>
    %16 = arith.maximumf %14, %15 : vector<128x128xf32>
    %17 = arith.truncf %16 : vector<128x128xf32> to vector<128x128xbf16>
    %c0_11 = arith.constant 0 : index
    %c0_12 = arith.constant 0 : index
    %18 = vector.load %arg4[%c0_11, %c0_12] : memref<128x128xbf16, #tpu.memory_space<vmem>>, vector<128x128xbf16>
    %cst_13 = arith.constant dense<0.000000e+00> : vector<128x128xf32>
    %19 = tpu.matmul %17, %18, %cst_13 {dimension_numbers = #tpu.dot_dimension_numbers<[1], [0], [0], [1], [0, 0, 1, 1], [], []>} : vector<128x128xbf16>, vector<128x128xbf16>, vector<128x128xf32> -> vector<128x128xf32>
    %c2 = arith.constant 2 : index
    %c0_14 = arith.constant 0 : index
    %20 = vector.load %arg6[%c2, %c0_14] : memref<3x128xf32, #tpu.memory_space<vmem>>, vector<1x128xf32>
    %21 = vector.broadcast %20 : vector<1x128xf32> to vector<128x128xf32>
    %22 = arith.addf %19, %21 : vector<128x128xf32>
    %cst_15 = arith.constant 0.000000e+00 : f32
    %23 = vector.broadcast %cst_15 : f32 to vector<128x128xf32>
    %24 = arith.maximumf %22, %23 : vector<128x128xf32>
    %c0_16 = arith.constant 0 : index
    %c0_17 = arith.constant 0 : index
    %25 = vector.load %arg5[%c0_16, %c0_17] : memref<1x128xf32, #tpu.memory_space<vmem>>, vector<1x128xf32>
    %26 = vector.broadcast %25 : vector<1x128xf32> to vector<128x128xf32>
    %27 = arith.mulf %24, %26 : vector<128x128xf32>
    %cst_18 = arith.constant dense<0.000000e+00> : vector<128xf32>
    %28 = vector.multi_reduction <add>, %27, %cst_18 [1] : vector<128x128xf32> to vector<128xf32>
    %c0_19 = arith.constant 0 : index
    %c0_20 = arith.constant 0 : index
    %29 = memref.load %arg7[%c0_19, %c0_20] : memref<1x1xf32, #tpu.memory_space<smem>>
    %30 = vector.broadcast %29 : f32 to vector<128xf32>
    %31 = arith.addf %28, %30 : vector<128xf32>
    %32 = vector.shape_cast %31 : vector<128xf32> to vector<1x128xf32>
    %c0_21 = arith.constant 0 : index
    %c0_22 = arith.constant 0 : index
    %33 = vector.load %arg8[%c0_21, %c0_22] : memref<1x128xf32, #tpu.memory_space<vmem>>, vector<1x128xf32>
    tpu.vector_store %arg8[%c0_21, %c0_22], %32 {strides = array<i32>} : memref<1x128xf32, #tpu.memory_space<vmem>>, vector<1x128xf32>,
    return
  }
  func.func @transform_0(%arg0: i32) -> (i32, i32) {
    %c0_i32 = arith.constant 0 : i32
    %c0_i32_0 = arith.constant 0 : i32
    return %arg0, %c0_i32 : i32, i32
  }
  func.func @transform_1(%arg0: i32) -> (i32, i32) {
    %c0_i32 = arith.constant 0 : i32
    %c0_i32_0 = arith.constant 0 : i32
    %c0_i32_1 = arith.constant 0 : i32
    return %c0_i32, %c0_i32_0 : i32, i32
  }
  func.func @transform_2(%arg0: i32) -> (i32, i32) {
    %c0_i32 = arith.constant 0 : i32
    %c0_i32_0 = arith.constant 0 : i32
    %c0_i32_1 = arith.constant 0 : i32
    return %c0_i32, %c0_i32_0 : i32, i32
  }
  func.func @transform_3(%arg0: i32) -> (i32, i32) {
    %c0_i32 = arith.constant 0 : i32
    %c0_i32_0 = arith.constant 0 : i32
    %c0_i32_1 = arith.constant 0 : i32
    return %c0_i32, %c0_i32_0 : i32, i32
  }
  func.func @transform_4(%arg0: i32) -> (i32, i32) {
    %c0_i32 = arith.constant 0 : i32
    %c0_i32_0 = arith.constant 0 : i32
    %c0_i32_1 = arith.constant 0 : i32
    return %c0_i32, %c0_i32_0 : i32, i32
  }
  func.func @transform_5(%arg0: i32) -> (i32, i32) {
    %c0_i32 = arith.constant 0 : i32
    %c0_i32_0 = arith.constant 0 : i32
    %c0_i32_1 = arith.constant 0 : i32
    return %c0_i32, %c0_i32_0 : i32, i32
  }
  func.func @transform_6(%arg0: i32) -> (i32, i32) {
    %c0_i32 = arith.constant 0 : i32
    %c0_i32_0 = arith.constant 0 : i32
    %c0_i32_1 = arith.constant 0 : i32
    return %c0_i32, %c0_i32_0 : i32, i32
  }
  func.func @transform_7(%arg0: i32) -> (i32, i32) {
    %c0_i32 = arith.constant 0 : i32
    %c0_i32_0 = arith.constant 0 : i32
    return %c0_i32, %arg0 : i32, i32
  }
}

</mosaic_0001>

<bundles_post_ra>
// kernel: tpu_custom_call.1
= control target key start
LH: loop header
LB: loop body
LE: loop exit
PB: predicated region body
PF: predicated region fallthrough
CT: control target
= control target key end

     0   :  { %s1733_s0 = inlined_call_operand.vmem [shape: f32[256,32], index: 0, kind: input, shape index: {}]   ;;  %s1734_s1 = inlined_call_operand.vmem [shape: bf16[32,128], index: 1, kind: input, shape index: {}]   ;;  %s1735_s2 = inlined_call_operand.vmem [shape: bf16[128,128], index: 2, kind: input, shape index: {}]   ;;  %s1736_s3 = inlined_call_operand.vmem [shape: bf16[128,128], index: 3, kind: input, shape index: {}]   ;;  %s1737_s4 = inlined_call_operand.vmem [shape: f32[1,128], index: 4, kind: input, shape index: {}]   ;;  %s1738_s5 = inlined_call_operand.vmem [shape: f32[3,128], index: 5, kind: input, shape index: {}]   ;;  %s1739_s6 = inlined_call_operand.<no memory space> [shape: f32[1,1], index: 6, kind: input, shape index: {}]   ;;  %s1740_s7 = inlined_call_operand.hbm [shape: f32[1,256], index: 7, kind: output, shape index: {}]  }
   0x1   :  { %12 = sst [smem:[#allocation2]] %s1739_s6 }
   0x2   :  { %13 = vsyncpa [#allocation4], 0 }
   0x3   :  { %15 = vsyncpa [#allocation4 + $0x1], 0  ;;  %s1443_s26 = smov 0   ;;  %s1445_s27 = smov 0  }
   0x4   :  { %s1447_s28 = smov 0   ;;  %s1449_s29 = smov 0  }
   0x5 LB: > { %s1112_s6 = sadd.s32 4294967295, %s1397_s29   ;;  %s1113_s30 = sadd.s32 4294967294, %s1397_s29   ;;  %s1397_s29 = sphi %s1449_s29, %s1746_s29   ;;  %s1393_s28 = sphi %s1447_s28, %s1745_s28   ;;  %s1389_s27 = sphi %s1445_s27, %s1744_s27   ;;  %s1385_s26 = sphi %s1443_s26, %s1743_s26  }
   0x6   : > { %s1466_s8 = sadd.s32 1, %s1397_s29   ;;  %s180_s9 = sadd.s32 1, %s1393_s28 }
   0x7   : > { %s177_s10 = ssub.s32 %s1397_s29, %s1466_s8  ;;  %p190_p0 = scmp.ne.s32.totalorder %s1393_s28, %s1389_s27 }
   0x8   : > { %p178_p1 = scmp.eq.s32.totalorder %s177_s10, 0  ;;  %p191_p2 = scmp.eq.s32.totalorder %s1112_s6, 1 }
   0x9   : > { %p196_p3 = scmp.ne.s32.totalorder %s1389_s27, %s1385_s26  ;;  %p197_p4 = scmp.eq.s32.totalorder %s1113_s30, 1 }
   0xa   : > { %s1476_s11 = scalar_select %p178_p1, %s1393_s28, %s180_s9  }
   0xb   : > { %p1478_p5 = por %p191_p2, %p190_p0  ;;  %p1482_p6 = por %p197_p4, %p196_p3 }
   0xc   : > { %p1116_p7 = scmp.ge.s32.totalorder %s1397_s29, 1  ;;  %p242_p8 = scmp.lt.s32.totalorder %s1397_s29, 3 }
   0xe   : > { %p243_p9 = pnand %p1116_p7, %p242_p8 }
   0xf   : > { %v1317_v0 = vld [vmem:[%s1734_s1] sm:$0xff] (!%p243_p9)   ;;  %s1491_s16 = sshll.u32 (!%p243_p9), %s1112_s6, 4  ;;  %v1318_v1 = vld [vmem:[%s1734_s1 + $0x8] sm:$0xff] (!%p243_p9)   ;;  %v1321_v4 = vld [vmem:[%s1735_s2 + $0x10] sm:$0xff] (!%p243_p9)   ;;  %vm325_vm0 = vcmask (!%p243_p9), 261120   ;;  %s898_s19 = sld [smem:[#allocation2]] (!%p243_p9) }
  0x10   : > { %246 = sbr.rel (%p243_p9) target bundleno = 885 (0x375), region = 48  ;;  %p274_p10 = scmp.lt.s32.totalorder (!%p243_p9), %s1491_s16, 31  ;;  %1194 = vmatprep.subr.bf16.mxu0 (!%p243_p9), %v1317_v0  ;;  %v1319_v2 = vld [vmem:[%s1735_s2] sm:$0xff] (!%p243_p9)   ;;  %v1320_v3 = vld [vmem:[%s1735_s2 + $0x8] sm:$0xff] (!%p243_p9)   ;;  %v1322_v14 = vld [vmem:[%s1735_s2 + $0x18] sm:$0xff] (!%p243_p9)   ;;  %vm943_vm1 = vcmask (!%p243_p9), 130112  }
  0x11   : > { %1195 = vmatpush3.bf16.msra.mxu0 (!%p243_p9), %v1317_v0  ;;  %1214 = vmatprep.subr.bf16.mxu1 (!%p243_p9), %v1319_v2  ;;  %v1323_v18 = vld [vmem:[%s1735_s2 + $0x20] sm:$0xff] (!%p243_p9)   ;;  %v1324_v22 = vld [vmem:[%s1735_s2 + $0x28] sm:$0xff] (!%p243_p9)   ;;  %v1325_v32 = vld [vmem:[%s1735_s2 + $0x30] sm:$0xff] (!%p243_p9)   ;;  %vm950_vm2 = vcmask (!%p243_p9), 195712   ;;  %vm957_vm3 = vcmask (!%p243_p9), 261312   ;;  %vm964_vm4 = vcmask (!%p243_p9), 326912   ;;  %s1689_s25 = scalar_lea.hbm (!%p243_p9), %s1740_s7, %s1491_s16 }
  0x12   : > { %1196 = vmatprep.subr.bf16.mxu0 (!%p243_p9), %v1318_v1  ;;  %1215 = vmatpush3.bf16.msra.mxu1 (!%p243_p9), %v1319_v2  ;;  %v1326_v33 = vld [vmem:[%s1735_s2 + $0x38] sm:$0xff] (!%p243_p9)   ;;  %v1327_v34 = vld [vmem:[%s1736_s3] sm:$0xff] (!%p243_p9)   ;;  %v1328_v35 = vld [vmem:[%s1736_s3 + $0x8] sm:$0xff] (!%p243_p9)   ;;  %vm971_vm5 = vcmask (!%p243_p9), 392512   ;;  %vm978_vm6 = vcmask (!%p243_p9), 458112   ;;  %vm985_vm7 = vcmask (!%p243_p9), 523712  }
  0x13   : > { %1216 = vmatprep.subr.bf16.mxu1 (!%p243_p9), %v1320_v3  ;;  %v1329_v36 = vld [vmem:[%s1736_s3 + $0x10] sm:$0xff] (!%p243_p9)   ;;  %v1330_v37 = vld [vmem:[%s1736_s3 + $0x18] sm:$0xff] (!%p243_p9)   ;;  %v1331_v38 = vld [vmem:[%s1736_s3 + $0x20] sm:$0xff] (!%p243_p9)   ;;  %vm992_vm8 = vcmask (!%p243_p9), 589312   ;;  %vm999_vm9 = vcmask (!%p243_p9), 654912   ;;  %vm1006_vm10 = vcmask (!%p243_p9), 720512  }
  0x14   : > { %v1332_v39 = vld [vmem:[%s1736_s3 + $0x28] sm:$0xff] (!%p243_p9)   ;;  %v1119_v40 = vld [vmem:[%s1738_s5] ss:$0 sm:$0xff] (!%p243_p9)  ;;  %vm1013_vm11 = vcmask (!%p243_p9), 786112   ;;  %s271_s20 = sand.u32 (!%p243_p9), 1, %s1389_s27   ;;  %vm1020_vm12 = vcmask (!%p243_p9), 851712  }
  0x15   : > { %1197 = vmatpush3.bf16.msra.mxu0 (!%p243_p9), %v1318_v1  ;;  %vm1027_vm13 = vcmask (!%p243_p9), 917312   ;;  %vm1034_vm14 = vcmask (!%p243_p9), 982912   ;;  %vm1041_vm15 = vcmask (!%p243_p9), 1048512   ;;  %s1046_s6 = scalar_lea.sflag (!%p243_p9), [#allocation4], %s271_s20  ;;  %s1399_s9 = smov (!%p243_p9), [#allocation3]  }
  0x16   : > { %1217 = vmatpush3.bf16.msra.mxu1 (!%p243_p9), %v1320_v3  ;;  %1246 = vmatprep.subr.bf16.mxu0 (!%p243_p9), %v1327_v34  ;;  %s1339_s10 = sshll.u32 (!%p243_p9), %s1399_s9, 4  ;;  %s1340_s10 = int_to_ptr.vmem [resolvable:$false] %s1339_s10 }
  0x17   : > { %s275_s21 = scalar_select %p274_p10, %s1491_s16, 31  ;;  %1218 = vmatprep.subr.bf16.mxu1 %v1321_v4 }
  0x18   : > { %s1341_s14 = scalar_lea.vmem %s1340_s10, 32 }
  0x19   : > { %s1118_s24 = sshll.u32 %s275_s21, 3  ;;  %s272_s21 = scalar_lea.vmem [#allocation3], %s271_s20 }
  0x1a   : > { %s1507_s30 = scalar_lea.vmem %s1733_s0, %s1118_s24  ;;  %1219 = vmatpush3.bf16.msra.mxu1 %v1321_v4  ;;  %s1058_s22 = sshll.u32 %s272_s21, 4  ;;  %s1691_s22 = int_to_ptr.vmem [resolvable:$true] %s1058_s22 }
  0x1b   : > { %v280_v5 = vld [vmem:[%s1507_s30] sm:$0xff]  ;;  %v281_v6 = vld [vmem:[%s1507_s30 + $0x8] sm:$0xff]  ;;  %v282_v7 = vld [vmem:[%s1507_s30 + $0x10] sm:$0xff]  ;;  %1220 = vmatprep.subr.bf16.mxu1 %v1322_v14  ;;  %p1342_p0 = scmp.lt.s32.totalorder %s1691_s22, %s1340_s10 }
  0x1c   : > { %v296_v8 = vpack.c.bf16 %v281_v6, %v280_v5  ;;  %v283_v9 = vld [vmem:[%s1507_s30 + $0x18] sm:$0xff]  ;;  %v284_v10 = vld [vmem:[%s1507_s30 + $0x20] sm:$0xff]  ;;  %v285_v11 = vld [vmem:[%s1507_s30 + $0x28] sm:$0xff] }
  0x1d   : > { %v297_v12 = vpack.c.bf16 %v283_v9, %v282_v7  ;;  %v298_v13 = vpack.c.bf16 %v285_v11, %v284_v10  ;;  %v286_v15 = vld [vmem:[%s1507_s30 + $0x30] sm:$0xff]  ;;  %v287_v16 = vld [vmem:[%s1507_s30 + $0x38] sm:$0xff]  ;;  %v288_v17 = vld [vmem:[%s1507_s30 + $0x40] sm:$0xff] }
  0x1e   : > { %1198 = vmatprep.mubr.msk.bf16.mxu0 %vm325_vm0, %v296_v8  ;;  %v289_v19 = vld [vmem:[%s1507_s30 + $0x48] sm:$0xff]  ;;  %v299_v20 = vpack.c.bf16 %v287_v16, %v286_v15  ;;  %1221 = vmatpush3.bf16.msra.mxu1 %v1322_v14  ;;  %v290_v23 = vld [vmem:[%s1507_s30 + $0x50] sm:$0xff]  ;;  %v291_v24 = vld [vmem:[%s1507_s30 + $0x58] sm:$0xff] }
  0x1f   : > { %1199 = vmatmul.mubr.msk.bf16.vlgmr.msra.gmra.mrb[0].mxu0 %vm325_vm0, %v297_v12  ;;  %v300_v21 = vpack.c.bf16 %v289_v19, %v288_v17  ;;  %1222 = vmatprep.subr.bf16.mxu1 %v1323_v18  ;;  %v292_v25 = vld [vmem:[%s1507_s30 + $0x60] sm:$0xff]  ;;  %v293_v26 = vld [vmem:[%s1507_s30 + $0x68] sm:$0xff]  ;;  %v301_v27 = vpack.c.bf16 %v291_v24, %v290_v23  ;;  %v294_v29 = vld [vmem:[%s1507_s30 + $0x70] sm:$0xff] }
  0x20   : > { %1202 = vmatprep.mubr.msk.bf16.mxu0 %vm325_vm0, %v298_v13  ;;  %v302_v28 = vpack.c.bf16 %v293_v26, %v292_v25  ;;  %v295_v30 = vld [vmem:[%s1507_s30 + $0x78] sm:$0xff]  ;;  %1247 = vmatpush3.bf16.msra.mxu0 %v1327_v34  ;;  %s1335_s30 = scalar_lea.vmem %s1691_s22, 16 }
  0x21   : > { %v303_v31 = vpack.c.bf16 %v295_v30, %v294_v29  ;;  %1248 = vmatprep.subr.bf16.mxu0 %v1328_v35  ;;  %v1334_v34 = vld [vmem:[%s1736_s3 + $0x38] sm:$0xff]   ;;  %p1336_p11 = scmp.ne.s32.totalorder %s1691_s22, %s1335_s30  ;;  %p1343_p1 = scmp.lt.s32.totalorder %s1341_s14, %s1335_s30 }
  0x22   : > { %1223 = vmatpush3.bf16.msra.mxu1 %v1323_v18 }
  0x23   : > { %1224 = vmatprep.subr.bf16.mxu1 %v1324_v22  ;;  %p1337_p12 = pnand %p1336_p11, %p1478_p5  ;;  %p1344_p2 = por %p1343_p1, %p1342_p0 }
  0x24   : > { %1249 = vmatpush3.bf16.msra.mxu0 %v1328_v35  ;;  %v1130_v35 = vld [vmem:[%s1738_s5 + $0x1] ss:$0 sm:$0xff] }
  0x25   : > { %1250 = vmatprep.subr.bf16.mxu0 %v1329_v36  ;;  %p1338_p13 = pneg %p1337_p12 }
  0x26   : > { %1225 = vmatpush3.bf16.msra.mxu1 %v1324_v22 }
  0x27   : > { %1203 = vmatmul.mubr.msk.bf16.gmra.mrb[4].mxu0 %vm325_vm0, %v299_v20  ;;  %1226 = vmatprep.subr.bf16.mxu1 %v1325_v32  ;;  %p1345_p3 = pnand %p1344_p2, %p1338_p13 }
  0x28   : > { %1206 = vmatprep.mubr.msk.bf16.mxu0 %vm325_vm0, %v300_v21  ;;  %1251 = vmatpush3.bf16.msra.mxu0 %v1329_v36 }
  0x29   : > { %1252 = vmatprep.subr.bf16.mxu0 %v1330_v37 }
  0x2a   : > { %1227 = vmatpush3.bf16.msra.mxu1 %v1325_v32 }
  0x2b   : > { %1228 = vmatprep.subr.bf16.mxu1 %v1326_v33 }
  0x2c   : > { %1253 = vmatpush3.bf16.msra.mxu0 %v1330_v37 }
  0x2d   : > { %1254 = vmatprep.subr.bf16.mxu0 %v1331_v38 }
  0x2e   : > { %1229 = vmatpush3.bf16.msra.mxu1 %v1326_v33  ;;  %v1333_v33 = vld [vmem:[%s1736_s3 + $0x30] sm:$0xff]  }
  0x2f   : > { %1207 = vmatmul.mubr.msk.bf16.gmra.mrb[8].mxu0 %vm325_vm0, %v301_v27 }
  0x30   : > { %1210 = vmatprep.mubr.msk.bf16.mxu0 %vm325_vm0, %v302_v28  ;;  %1255 = vmatpush3.bf16.msra.mxu0 %v1331_v38 }
  0x31   : > { %1256 = vmatprep.subr.bf16.mxu0 %v1332_v39 }
  0x34   : > { %1257 = vmatpush3.bf16.msra.mxu0 %v1332_v39 }
  0x35   : > { %1258 = vmatprep.subr.bf16.mxu0 %v1333_v33 }
  0x37   : > { %1211 = vmatmul.mubr.msk.bf16.gmra.mrb[12].mxu0 %vm325_vm0, %v303_v31 }
  0x38   : > { %1259 = vmatpush3.bf16.msra.mxu0 %v1333_v33 }
  0x39   : > { %1260 = vmatprep.subr.bf16.mxu0 %v1334_v34 }
  0x3c   : > { %1261 = vmatpush3.bf16.msra.mxu0 %v1334_v34  ;;  %v1591_v34 = vld [vmem:[%s1737_s4] ss:$0 sm:$0xff] }
  0xf2   : > { %v1200_v41 = vpop.f32.mrb[0].mxu0 }
  0xf3   : > { %v393_v42 = vadd.f32 %v1200_v41, %v1119_v40  ;;  %v384_v43 = vpop.f32.mrb[1].mxu0 }
  0xf4   : > { %v385_v44 = vadd.f32 %v1119_v40, %v384_v43  ;;  %v1201_v45 = vpop.f32.mrb[2].mxu0 }
  0xf5   : > { %v396_v46 = vadd.f32 %v1201_v45, %v1119_v40  ;;  %v387_v47 = vpop.f32.mrb[3].mxu0  ;;  %v449_v49 = vmax.f32 %v393_v42, 0.0 }
  0xf6   : > { %v388_v48 = vadd.f32 %v1119_v40, %v387_v47  ;;  %v447_v51 = vmax.f32 %v385_v44, 0.0 }
  0xf7   : > { %v450_v50 = vmax.f32 %v396_v46, 0.0 }
  0xf8   : > { %v448_v52 = vmax.f32 %v388_v48, 0.0 }
  0xf9   : > { %v464_v53 = vpack.c.bf16 %v450_v50, %v449_v49 }
  0xfa   : > { %v1204_v54 = vpop.f32.mrb[4].mxu0  ;;  %v463_v55 = vpack.c.bf16 %v448_v52, %v447_v51 }
  0xfb   : > { %v409_v56 = vadd.f32 %v1204_v54, %v1119_v40  ;;  %v400_v57 = vpop.f32.mrb[5].mxu0 }
  0xfc   : > { %v401_v58 = vadd.f32 %v1119_v40, %v400_v57  ;;  %v1205_v59 = vpop.f32.mrb[6].mxu0  ;;  %1230 = vmatprep.mubr.bf16.mxu1 %v463_v55 }
  0xfd   : > { %v412_v60 = vadd.f32 %v1205_v59, %v1119_v40  ;;  %v403_v61 = vpop.f32.mrb[7].mxu0  ;;  %1231 = vmatmul.mubr.bf16.vlgmr.msra.gmra.mrb[0].mxu1 %v464_v53  ;;  %v453_v63 = vmax.f32 %v409_v56, 0.0 }
  0xfe   : > { %v404_v62 = vadd.f32 %v1119_v40, %v403_v61  ;;  %v451_v1 = vmax.f32 %v401_v58, 0.0 }
  0xff   : > { %v454_v0 = vmax.f32 %v412_v60, 0.0 }
 0x100   : > { %v452_v2 = vmax.f32 %v404_v62, 0.0 }
 0x101   : > { %v466_v3 = vpack.c.bf16 %v454_v0, %v453_v63 }
 0x102   : > { %v465_v4 = vpack.c.bf16 %v452_v2, %v451_v1  ;;  %v1208_v5 = vpop.f32.mrb[8].mxu0 }
 0x103   : > { %v425_v6 = vadd.f32 %v1208_v5, %v1119_v40  ;;  %v416_v7 = vpop.f32.mrb[9].mxu0 }
 0x104   : > { %v417_v8 = vadd.f32 %v1119_v40, %v416_v7  ;;  %v1209_v9 = vpop.f32.mrb[10].mxu0  ;;  %1234 = vmatprep.mubr.bf16.mxu1 %v465_v4 }
 0x105   : > { %v428_v10 = vadd.f32 %v1209_v9, %v1119_v40  ;;  %v419_v11 = vpop.f32.mrb[11].mxu0  ;;  %1235 = vmatmul.mubr.bf16.gmra.mrb[4].mxu1 %v466_v3  ;;  %v457_v13 = vmax.f32 %v425_v6, 0.0 }
 0x106   : > { %v420_v12 = vadd.f32 %v1119_v40, %v419_v11  ;;  %v455_v15 = vmax.f32 %v417_v8, 0.0 }
 0x107   : > { %v458_v14 = vmax.f32 %v428_v10, 0.0 }
 0x108   : > { %v456_v16 = vmax.f32 %v420_v12, 0.0 }
 0x109   : > { %v468_v17 = vpack.c.bf16 %v458_v14, %v457_v13 }
 0x10a   : > { %v467_v18 = vpack.c.bf16 %v456_v16, %v455_v15  ;;  %v1212_v19 = vpop.f32.mrb[12].mxu0 }
 0x10b   : > { %v441_v20 = vadd.f32 %v1212_v19, %v1119_v40  ;;  %v432_v21 = vpop.f32.mrb[13].mxu0 }
 0x10c   : > { %v433_v22 = vadd.f32 %v1119_v40, %v432_v21  ;;  %v1213_v23 = vpop.f32.mrb[14].mxu0  ;;  %1238 = vmatprep.mubr.bf16.mxu1 %v467_v18 }
 0x10d   : > { %v444_v24 = vadd.f32 %v1213_v23, %v1119_v40  ;;  %v435_v25 = vpop.f32.mrb[15].mxu0  ;;  %1239 = vmatmul.mubr.bf16.gmra.mrb[8].mxu1 %v468_v17  ;;  %v461_v27 = vmax.f32 %v441_v20, 0.0 }
 0x10e   : > { %v436_v26 = vadd.f32 %v1119_v40, %v435_v25  ;;  %v459_v29 = vmax.f32 %v433_v22, 0.0 }
 0x10f   : > { %v462_v28 = vmax.f32 %v444_v24, 0.0 }
 0x110   : > { %v460_v30 = vmax.f32 %v436_v26, 0.0 }
 0x111   : > { %v470_v31 = vpack.c.bf16 %v462_v28, %v461_v27  ;;  %v1584_v28 = vld [vmem:[%s1738_s5 + $0x2] ss:$0 sm:$0xff] }
 0x112   : > { %v469_v32 = vpack.c.bf16 %v460_v30, %v459_v29 }
 0x114   : > { %1242 = vmatprep.mubr.bf16.mxu1 %v469_v32 }
 0x115   : > { %1243 = vmatmul.mubr.bf16.gmra.mrb[12].mxu1 %v470_v31 }
 0x1d0   : > { %v1232_v36 = vpop.f32.mrb[0].mxu1 }
 0x1d1   : > { %v583_v37 = vadd.f32 %v1232_v36, %v1130_v35  ;;  %v574_v38 = vpop.f32.mrb[1].mxu1 }
 0x1d2   : > { %v575_v39 = vadd.f32 %v1130_v35, %v574_v38  ;;  %v1233_v40 = vpop.f32.mrb[2].mxu1 }
 0x1d3   : > { %v586_v41 = vadd.f32 %v1233_v40, %v1130_v35  ;;  %v577_v42 = vpop.f32.mrb[3].mxu1  ;;  %v639_v44 = vmax.f32 %v583_v37, 0.0 }
 0x1d4   : > { %v578_v43 = vadd.f32 %v1130_v35, %v577_v42  ;;  %v637_v46 = vmax.f32 %v575_v39, 0.0 }
 0x1d5   : > { %v640_v45 = vmax.f32 %v586_v41, 0.0 }
 0x1d6   : > { %v638_v47 = vmax.f32 %v578_v43, 0.0 }
 0x1d7   : > { %v654_v48 = vpack.c.bf16 %v640_v45, %v639_v44 }
 0x1d8   : > { %v653_v49 = vpack.c.bf16 %v638_v47, %v637_v46  ;;  %v1236_v50 = vpop.f32.mrb[4].mxu1 }
 0x1d9   : > { %v599_v51 = vadd.f32 %v1236_v50, %v1130_v35  ;;  %v590_v52 = vpop.f32.mrb[5].mxu1 }
 0x1da   : > { %v591_v53 = vadd.f32 %v1130_v35, %v590_v52  ;;  %v1237_v54 = vpop.f32.mrb[6].mxu1  ;;  %1262 = vmatprep.mubr.bf16.mxu0 %v653_v49 }
 0x1db   : > { %v602_v55 = vadd.f32 %v1237_v54, %v1130_v35  ;;  %v593_v56 = vpop.f32.mrb[7].mxu1  ;;  %1263 = vmatmul.mubr.bf16.vlgmr.msra.gmra.mrb[16].mxu0 %v654_v48  ;;  %v643_v58 = vmax.f32 %v599_v51, 0.0 }
 0x1dc   : > { %v594_v57 = vadd.f32 %v1130_v35, %v593_v56  ;;  %v641_v60 = vmax.f32 %v591_v53, 0.0 }
 0x1dd   : > { %v644_v59 = vmax.f32 %v602_v55, 0.0 }
 0x1de   : > { %v642_v61 = vmax.f32 %v594_v57, 0.0 }
 0x1df   : > { %v656_v62 = vpack.c.bf16 %v644_v59, %v643_v58 }
 0x1e0   : > { %v655_v63 = vpack.c.bf16 %v642_v61, %v641_v60  ;;  %v1240_v0 = vpop.f32.mrb[8].mxu1 }
 0x1e1   : > { %v615_v1 = vadd.f32 %v1240_v0, %v1130_v35  ;;  %v606_v2 = vpop.f32.mrb[9].mxu1 }
 0x1e2   : > { %v607_v3 = vadd.f32 %v1130_v35, %v606_v2  ;;  %v1241_v4 = vpop.f32.mrb[10].mxu1  ;;  %1266 = vmatprep.mubr.bf16.mxu0 %v655_v63 }
 0x1e3   : > { %v618_v5 = vadd.f32 %v1241_v4, %v1130_v35  ;;  %v609_v6 = vpop.f32.mrb[11].mxu1  ;;  %1267 = vmatmul.mubr.bf16.gmra.mrb[20].mxu0 %v656_v62  ;;  %v647_v8 = vmax.f32 %v615_v1, 0.0 }
 0x1e4   : > { %v610_v7 = vadd.f32 %v1130_v35, %v609_v6  ;;  %v645_v10 = vmax.f32 %v607_v3, 0.0 }
 0x1e5   : > { %v648_v9 = vmax.f32 %v618_v5, 0.0 }
 0x1e6   : > { %v646_v11 = vmax.f32 %v610_v7, 0.0 }
 0x1e7   : > { %v658_v12 = vpack.c.bf16 %v648_v9, %v647_v8 }
 0x1e8   : > { %v657_v13 = vpack.c.bf16 %v646_v11, %v645_v10  ;;  %v1244_v14 = vpop.f32.mrb[12].mxu1 }
 0x1e9   : > { %v631_v15 = vadd.f32 %v1244_v14, %v1130_v35  ;;  %v622_v16 = vpop.f32.mrb[13].mxu1 }
 0x1ea   : > { %v623_v17 = vadd.f32 %v1130_v35, %v622_v16  ;;  %v1245_v18 = vpop.f32.mrb[14].mxu1  ;;  %1270 = vmatprep.mubr.bf16.mxu0 %v657_v13 }
 0x1eb   : > { %v634_v19 = vadd.f32 %v1245_v18, %v1130_v35  ;;  %v625_v20 = vpop.f32.mrb[15].mxu1  ;;  %1271 = vmatmul.mubr.bf16.gmra.mrb[24].mxu0 %v658_v12  ;;  %v651_v22 = vmax.f32 %v631_v15, 0.0 }
 0x1ec   : > { %v626_v21 = vadd.f32 %v1130_v35, %v625_v20  ;;  %v649_v24 = vmax.f32 %v623_v17, 0.0 }
 0x1ed   : > { %v652_v23 = vmax.f32 %v634_v19, 0.0 }
 0x1ee   : > { %v650_v25 = vmax.f32 %v626_v21, 0.0 }
 0x1ef   : > { %v660_v26 = vpack.c.bf16 %v652_v23, %v651_v22 }
 0x1f0   : > { %v659_v27 = vpack.c.bf16 %v650_v25, %v649_v24 }
 0x1f2   : > { %1274 = vmatprep.mubr.bf16.mxu0 %v659_v27 }
 0x1f3   : > { %1275 = vmatmul.mubr.bf16.gmra.mrb[28].mxu0 %v660_v26 }
 0x2ae   : > { %v1264_v29 = vpop.f32.mrb[16].mxu0 }
 0x2af   : > { %v773_v30 = vadd.f32 %v1264_v29, %v1584_v28  ;;  %v764_v31 = vpop.f32.mrb[17].mxu0 }
 0x2b0   : > { %v765_v32 = vadd.f32 %v1584_v28, %v764_v31  ;;  %v1265_v33 = vpop.f32.mrb[18].mxu0  ;;  %v932_v31 = vlaneseq }
 0x2b1   : > { %v829_v35 = vmax.f32 %v773_v30, 0.0  ;;  %v776_v36 = vadd.f32 %v1265_v33, %v1584_v28  ;;  %v767_v37 = vpop.f32.mrb[19].mxu0 }
 0x2b2   : > { %v827_v38 = vmax.f32 %v765_v32, 0.0  ;;  %v768_v39 = vadd.f32 %v1584_v28, %v767_v37  ;;  %v1628_v37 = vstv %s898_s19 }
 0x2b3   : > { %v830_v40 = vmax.f32 %v776_v36, 0.0  ;;  %v852_v41 = vmul.f32 %v1591_v34, %v829_v35  ;;  %v1626_v35 = vshrl.u32 %v932_v31, 7 }
 0x2b4   : > { %v828_v42 = vmax.f32 %v768_v39, 0.0  ;;  %v850_v43 = vmul.f32 %v1591_v34, %v827_v38 }
 0x2b5   : > { %870 = vadd.xlane.f32.xlu1 %v852_v41  ;;  %v853_v47 = vmul.f32 %v1591_v34, %v830_v40 }
 0x2b6   : > { %v1268_v44 = vpop.f32.mrb[20].mxu0  ;;  %866 = vadd.xlane.f32.xlu0 %v850_v43  ;;  %v851_v50 = vmul.f32 %v1591_v34, %v828_v42 }
 0x2b7   : > { %v789_v45 = vadd.f32 %v1268_v44, %v1584_v28  ;;  %v780_v46 = vpop.f32.mrb[21].mxu0 }
 0x2b8   : > { %v781_v48 = vadd.f32 %v1584_v28, %v780_v46  ;;  %v1269_v49 = vpop.f32.mrb[22].mxu0 }
 0x2b9   : > { %v833_v51 = vmax.f32 %v789_v45, 0.0  ;;  %v792_v52 = vadd.f32 %v1269_v49, %v1584_v28  ;;  %872 = vadd.xlane.f32.xlu1 %v853_v47  ;;  %v783_v53 = vpop.f32.mrb[23].mxu0 }
 0x2ba   : > { %v784_v54 = vadd.f32 %v1584_v28, %v783_v53  ;;  %868 = vadd.xlane.f32.xlu0 %v851_v50  ;;  %v831_v57 = vmax.f32 %v781_v48, 0.0 }
 0x2bb   : > { %v834_v55 = vmax.f32 %v792_v52, 0.0  ;;  %v856_v56 = vmul.f32 %v1591_v34, %v833_v51 }
 0x2bc   : > { %v832_v58 = vmax.f32 %v784_v54, 0.0  ;;  %v854_v1 = vmul.f32 %v1591_v34, %v831_v57 }
 0x2bd   : > { %v857_v59 = vmul.f32 %v1591_v34, %v834_v55 }
 0x2be   : > { %v1272_v60 = vpop.f32.mrb[24].mxu0  ;;  %878 = vadd.xlane.f32.xlu0 %v856_v56  ;;  %v855_v5 = vmul.f32 %v1591_v34, %v832_v58 }
 0x2bf   : > { %v805_v61 = vadd.f32 %v1272_v60, %v1584_v28  ;;  %880 = vadd.xlane.f32.xlu1 %v857_v59  ;;  %v796_v62 = vpop.f32.mrb[25].mxu0 }
 0x2c0   : > { %v797_v63 = vadd.f32 %v1584_v28, %v796_v62  ;;  %v1273_v0 = vpop.f32.mrb[26].mxu0 }
 0x2c1   : > { %v837_v2 = vmax.f32 %v805_v61, 0.0  ;;  %v808_v3 = vadd.f32 %v1273_v0, %v1584_v28  ;;  %v799_v4 = vpop.f32.mrb[27].mxu0 }
 0x2c2   : > { %v800_v6 = vadd.f32 %v1584_v28, %v799_v4  ;;  %874 = vadd.xlane.f32.xlu0 %v854_v1  ;;  %v835_v9 = vmax.f32 %v797_v63, 0.0 }
 0x2c3   : > { %v838_v7 = vmax.f32 %v808_v3, 0.0  ;;  %876 = vadd.xlane.f32.xlu1 %v855_v5  ;;  %v860_v8 = vmul.f32 %v1591_v34, %v837_v2 }
 0x2c4   : > { %v836_v10 = vmax.f32 %v800_v6, 0.0  ;;  %v858_v17 = vmul.f32 %v1591_v34, %v835_v9 }
 0x2c5   : > { %v861_v11 = vmul.f32 %v1591_v34, %v838_v7 }
 0x2c6   : > { %v1276_v12 = vpop.f32.mrb[28].mxu0  ;;  %886 = vadd.xlane.f32.xlu0 %v860_v8  ;;  %v859_v19 = vmul.f32 %v1591_v34, %v836_v10 }
 0x2c7   : > { %v812_v13 = vpop.f32.mrb[29].mxu0  ;;  %888 = vadd.xlane.f32.xlu1 %v861_v11  ;;  %v821_v14 = vadd.f32 %v1276_v12, %v1584_v28 }
 0x2c8   : > { %v813_v15 = vadd.f32 %v1584_v28, %v812_v13  ;;  %v1277_v16 = vpop.f32.mrb[30].mxu0 }
 0x2c9   : > { %v815_v18 = vpop.f32.mrb[31].mxu0  ;;  %v824_v21 = vadd.f32 %v1277_v16, %v1584_v28  ;;  %v841_v23 = vmax.f32 %v821_v14, 0.0 }
 0x2ca   : > { %v839_v20 = vmax.f32 %v813_v15, 0.0  ;;  %v816_v22 = vadd.f32 %v1584_v28, %v815_v18  ;;  %882 = vadd.xlane.f32.xlu0 %v858_v17  ;;  %v1623_v28 = vand.u32 127, %v932_v31 }
 0x2cb   : > { %884 = vadd.xlane.f32.xlu1 %v859_v19  ;;  %v842_v26 = vmax.f32 %v824_v21, 0.0  ;;  %v864_v29 = vmul.f32 %v1591_v34, %v841_v23 }
 0x2cc   : > { %v840_v24 = vmax.f32 %v816_v22, 0.0  ;;  %v862_v25 = vmul.f32 %v1591_v34, %v839_v20  ;;  %v938_v33 = vadd.s32 4294967288, %v1623_v28  ;;  %v945_v38 = vadd.s32 4294967280, %v1623_v28 }
 0x2cd   : > { %v865_v30 = vmul.f32 %v1591_v34, %v842_v26  ;;  %v952_v45 = vadd.s32 4294967272, %v1623_v28  ;;  %v959_v48 = vadd.s32 4294967264, %v1623_v28  ;;  %v966_v51 = vadd.s32 4294967256, %v1623_v28 }
 0x2ce   : > { %890 = vadd.xlane.f32.xlu0 %v862_v25  ;;  %v863_v27 = vmul.f32 %v1591_v34, %v840_v24  ;;  %v941_v39 = vsub.s32 %v938_v33, %v1626_v35  ;;  %v936_v34 = vsub.s32 %v1623_v28, %v1626_v35  ;;  %v948_v44 = vsub.s32 %v945_v38, %v1626_v35 }
 0x2cf   : > { %v973_v52 = vadd.s32 4294967248, %v1623_v28  ;;  %v955_v54 = vsub.s32 %v952_v45, %v1626_v35  ;;  %v962_v58 = vsub.s32 %v959_v48, %v1626_v35  ;;  %v980_v59 = vadd.s32 4294967240, %v1623_v28 }
 0x2d0   : > { %892 = vadd.xlane.f32.xlu1 %v863_v27  ;;  %v969_v61 = vsub.s32 %v966_v51, %v1626_v35  ;;  %v1001_v4 = vadd.s32 4294967216, %v1623_v28  ;;  %v987_v7 = vadd.s32 4294967232, %v1623_v28  ;;  %v1008_v11 = vadd.s32 4294967208, %v1623_v28 }
 0x2d1   : > { %v976_v63 = vsub.s32 %v973_v52, %v1626_v35  ;;  %v994_v12 = vadd.s32 4294967224, %v1623_v28  ;;  %v983_v15 = vsub.s32 %v980_v59, %v1626_v35  ;;  %v1015_v21 = vadd.s32 4294967200, %v1623_v28 }
 0x2d2   : > { %894 = vadd.xlane.f32.xlu0 %v864_v29  ;;  %v1004_v19 = vsub.s32 %v1001_v4, %v1626_v35  ;;  %v990_v20 = vsub.s32 %v987_v7, %v1626_v35  ;;  %v1011_v22 = vsub.s32 %v1008_v11, %v1626_v35  ;;  %v1022_v25 = vadd.s32 4294967192, %v1623_v28 }
 0x2d3   : > { %v997_v24 = vsub.s32 %v994_v12, %v1626_v35  ;;  %v1018_v38 = vsub.s32 %v1015_v21, %v1626_v35 }
 0x2d4   : > { %896 = vadd.xlane.f32.xlu1 %v865_v30 }
 0x342   : > { %v871_v32 = vpop.xlane.xlu1 %870 }
 0x343   : > { %v867_v36 = vpop.xlane.xlu0 %866  ;;  %v902_v46 = vadd.f32 %v1628_v37, %v871_v32 }
 0x344   : > { %v900_v40 = vadd.f32 %v1628_v37, %v867_v36 }
 0x345   : > { %v949_v57 = vrot.slane %v902_v46, %v948_v44  ;;  %v1036_v46 = vadd.s32 4294967176, %v1623_v28 }
 0x346   : > { %v873_v42 = vpop.xlane.xlu1 %872  ;;  %v937_v49 = vrot.slane %v900_v40, %v936_v34 }
 0x347   : > { %v869_v41 = vpop.xlane.xlu0 %868  ;;  %v903_v55 = vadd.f32 %v1628_v37, %v873_v42  ;;  %v1025_v42 = vsub.s32 %v1022_v25, %v1626_v35 }
 0x348   : > { %v901_v43 = vadd.f32 %v1628_v37, %v869_v41 }
 0x349   : > { %v956_v2 = vrot.slane %v903_v55, %v955_v54 }
 0x34a   : > { %v942_v47 = vrot.slane %v901_v43, %v941_v39  ;;  %v1029_v39 = vadd.s32 4294967184, %v1623_v28 }
 0x34b   : > { %v879_v50 = vpop.xlane.xlu0 %878 }
 0x34c   : > { %v881_v53 = vpop.xlane.xlu1 %880  ;;  %v944_v56 = vsel %vm943_vm1, %v942_v47, %v937_v49  ;;  %v906_v5 = vadd.f32 %v1628_v37, %v879_v50 }
 0x34d   : > { %v951_v62 = vsel %vm950_vm2, %v949_v57, %v944_v56  ;;  %v907_v16 = vadd.f32 %v1628_v37, %v881_v53  ;;  %v1032_v53 = vsub.s32 %v1029_v39, %v1626_v35 }
 0x34e   : > { %v958_v8 = vsel %vm957_vm3, %v956_v2, %v951_v62  ;;  %v977_v18 = vrot.slane %v906_v5, %v976_v63 }
 0x34f   : > { %v875_v60 = vpop.xlane.xlu0 %874  ;;  %v984_v31 = vrot.slane %v907_v16, %v983_v15 }
 0x350   : > { %v904_v0 = vadd.f32 %v1628_v37, %v875_v60  ;;  %v877_v1 = vpop.xlane.xlu1 %876 }
 0x351   : > { %v905_v3 = vadd.f32 %v1628_v37, %v877_v1 }
 0x352   : > { %v963_v6 = vrot.slane %v904_v0, %v962_v58  ;;  %v1039_v58 = vsub.s32 %v1036_v46, %v1626_v35 }
 0x353   : > { %v970_v9 = vrot.slane %v905_v3, %v969_v61  ;;  %v887_v10 = vpop.xlane.xlu0 %886 }
 0x354   : > { %v965_v13 = vsel %vm964_vm4, %v963_v6, %v958_v8  ;;  %v889_v14 = vpop.xlane.xlu1 %888  ;;  %v910_v27 = vadd.f32 %v1628_v37, %v887_v10 }
 0x355   : > { %v972_v17 = vsel %vm971_vm5, %v970_v9, %v965_v13  ;;  %v911_v32 = vadd.f32 %v1628_v37, %v889_v14 }
 0x356   : > { %v979_v26 = vsel %vm978_vm6, %v977_v18, %v972_v17  ;;  %v1005_v43 = vrot.slane %v910_v27, %v1004_v19 }
 0x357   : > { %v883_v23 = vpop.xlane.xlu0 %882  ;;  %v986_v34 = vsel %vm985_vm7, %v984_v31, %v979_v26  ;;  %v1012_v47 = vrot.slane %v911_v32, %v1011_v22 }
 0x358   : > { %v908_v29 = vadd.f32 %v1628_v37, %v883_v23  ;;  %v885_v30 = vpop.xlane.xlu1 %884 }
 0x359   : > { %v909_v33 = vadd.f32 %v1628_v37, %v885_v30 }
 0x35a   : > { %v991_v36 = vrot.slane %v908_v29, %v990_v20 }
 0x35b   : > { %v998_v40 = vrot.slane %v909_v33, %v997_v24  ;;  %v891_v41 = vpop.xlane.xlu0 %890 }
 0x35c   : > { %v993_v44 = vsel %vm992_vm8, %v991_v36, %v986_v34  ;;  %v912_v45 = vadd.f32 %v1628_v37, %v891_v41 }
 0x35d   : > { %v1000_v48 = vsel %vm999_vm9, %v998_v40, %v993_v44  ;;  %v893_v49 = vpop.xlane.xlu1 %892 }
 0x35e   : > { %v1007_v50 = vsel %vm1006_vm10, %v1005_v43, %v1000_v48  ;;  %v1019_v51 = vrot.slane %v912_v45, %v1018_v38  ;;  %v913_v52 = vadd.f32 %v1628_v37, %v893_v49 }
 0x35f   : > { %v1014_v54 = vsel %vm1013_vm11, %v1012_v47, %v1007_v50  ;;  %v895_v55 = vpop.xlane.xlu0 %894 }
 0x360   : > { %v1021_v28 = vsel %vm1020_vm12, %v1019_v51, %v1014_v54  ;;  %v1026_v56 = vrot.slane %v913_v52, %v1025_v42  ;;  %v914_v57 = vadd.f32 %v1628_v37, %v895_v55 }
 0x361   : > { %v897_v59 = vpop.xlane.xlu1 %896 }
 0x362   : > { %v1028_v60 = vsel %vm1027_vm13, %v1026_v56, %v1021_v28  ;;  %v1033_v61 = vrot.slane %v914_v57, %v1032_v53  ;;  %v915_v62 = vadd.f32 %v1628_v37, %v897_v59 }
 0x364   : > { %v1040_v63 = vrot.slane %v915_v62, %v1039_v58  ;;  %v1035_v0 = vsel %vm1034_vm14, %v1033_v61, %v1028_v60 }
 0x366   : > { %v1042_v35 = vsel %vm1041_vm15, %v1040_v63, %v1035_v0 }
 0x367   : > { %1044 = vst [vmem:[%s272_s21] sm:$0x1] %v1042_v35 }
 0x368   : > { %1348 = shalt.err (!%p1345_p3)
}
 0x369   : > { %s1349_s16 = scalar_lea.hbm %s1689_s25, 16  ;;  %s1353_s18 = scalar_lea.hbm %s1740_s7, 32 }
 0x36a   : > { %p1350_p4 = scmp.ne.s32.totalorder %s1689_s25, %s1349_s16  ;;  %p1354_p9 = scmp.lt.u32.totalorder %s1689_s25, %s1740_s7 }
 0x36b   : > { %p1355_p10 = scmp.lt.u32.totalorder %s1353_s18, %s1349_s16  ;;  %p1357_p12 = scmp.lt.u32.totalorder %s1349_s16, %s1689_s25 }
 0x36c   : > { %p1351_p7 = pnand %p1350_p4, %p1478_p5 }
 0x36d   : > { %p1356_p11 = por %p1355_p10, %p1354_p9 }
 0x36e   : > { %p1352_p8 = pneg %p1351_p7 }
 0x36f   : > { %p1358_p13 = por %p1357_p12, %p1356_p11 }
 0x371   : > { %p1359_p0 = pnand %p1358_p13, %p1352_p8 }
 0x373   : > { %1362 = shalt.err (!%p1359_p0)
}
 0x374   : > { %1278 = dma.vmem_to_hbm [thread:$0]  (%p1478_p5), %s1691_s22, 16, %s1689_s25, %s1046_s6  }
 0x375 PF: > { %p1284_p1 = scmp.ge.s32.totalorder %s1397_s29, 2  ;;  %s1070_s21 = sand.u32 1, %s1385_s26  }
 0x376   : > { %s1071_s23 = scalar_lea.sflag [#allocation4], %s1070_s21 }
 0x377   : > { %p1281_p2 = pnand %p1284_p1, %p1482_p6 }
 0x379   : > { %1380 = dma.done.wait (!%p1281_p2), %s1071_s23, 16  }
 0x37a   : > { %1382 = vsyncadd (!%p1281_p2), %s1071_s23, 4294967280  ;;  %p18_p3 = scmp.ge.s32.totalorder %s1466_s8, 4   ;;  %s1743_s26 = smov %s1389_s27 }
 0x37b   : > { %s1744_s27 = smov %s1393_s28  ;;  %s1745_s28 = smov %s1476_s11 }
 0x37c   : > { %s1746_s29 = smov %s1466_s8  ;;  %20 = sbr.rel (!%p18_p3) target bundleno = 5 (0x5), region = 83 }
 0x383   :  { %1075 = vsyncpa [#allocation4], 1 }
 0x384   :  { %1077 = vsyncpa [#allocation4 + $0x1], 1 }

</bundles_post_ra>
